<compile_context>
chip_gen: v7x
topology: tpu7x:2x2x1
jax: 0.10.0
libtpu: 0.0.40
codegen_flags: <defaults>
</compile_context>

<pallas_src>
import numpy as np
import jax
import jax.numpy as jnp
from jax.experimental import pallas as pl
from jax.experimental.pallas import tpu as pltpu

N_BATCH = 16
LATENT = 16
H = W = 8
TM = 8                      # batch-tile rows per grid step (raise for large batches)

# ---------------------------------------------------------------------------
# Packed-slab layouts (shared by pack_params and the kernel).
# wslab: (720, 128) bf16.  Every matrix starts at lane 0; row offsets and row counts are
#        multiples of 16 (bf16 sublane packing), so all in-kernel slices are tile-aligned.
#        The 144-wide conv / decoder matrices are split into a 128-band and a 16-band.
# bslab: (13, 128) f32, one bias / c-column row per entry.
# ---------------------------------------------------------------------------
W_LAYOUT = {                 # name -> (row_start, num_rows, num_cols)
    'conv_a':   (0,   64,  128),   # Conv2d(1,4,3) lowered to (64 -> 144), cols   0:128
    'conv_b':   (64,  64,  16),    #                                      cols 128:144
    'e0_a':     (128, 128, 64),    # Linear(144,64), rows   0:128
    'e0_b':     (256, 16,  64),    #                 rows 128:144
    'e1':       (272, 64,  32),    # Linear(64, 32)
    'le':       (336, 32,  32),    # linear_enc Linear(33,32), h-part (rows 0:32)
    'lm':       (368, 32,  16),    # linear_mean Linear(32,16)
    'ls':       (400, 32,  16),    # linear_sig  Linear(32,16)
    'd1':       (432, 16,  64),    # decoder Linear(17,64), z-part (rows 0:16)
    'd0_a':     (448, 64,  128),   # decoder Linear(64,144), cols   0:128
    'd0_b':     (512, 64,  16),    #                         cols 128:144
    'deconv_a': (576, 128, 64),    # ConvTranspose2d(4,1,3) lowered to (144 -> 64), rows 0:128
    'deconv_b': (704, 16,  64),    #                                               rows 128:144
}
W_ROWS, W_COLS = 720, 128

B_LAYOUT = {                 # name -> (row, num_cols)
    'conv_a':   (0, 128),   # conv1 bias (channel bias repeated over its 36 positions), 0:128
    'conv_b':   (1, 16),    #                                                         128:144
    'e0':       (2, 64),
    'e1':       (3, 32),
    'le':       (4, 32),
    'le_c':     (5, 32),    # c-column of linear_enc weight
    'lm':       (6, 16),
    'ls':       (7, 16),
    'd1':       (8, 64),
    'd1_c':     (9, 64),    # c-column of decoder Linear(17,64) weight
    'd0_a':     (10, 128),  # decoder Linear(64,144) bias, 0:128
    'd0_b':     (11, 16),   #                              128:144
    'deconv':   (12, 64),   # deconv bias broadcast over the 64 output pixels
}
B_ROWS = 13


# ---------------------------------------------------------------------------
# Single fused kernel: conv1 + encoder MLP + reparameterization + decoder MLP + deconv.
# Processes one (TM, 128) activation tile per grid step; weight/bias slabs are VMEM-resident.
# ---------------------------------------------------------------------------
def cvae_fused_kernel(act_ref, w_ref, b_ref, out_ref):
    f32 = jnp.float32
    act = act_ref[...]                      # (TM, 128) packed activations
    x = act[:, 0:64]                        # flattened (1,8,8) image
    eps = act[:, 64:80]                     # N(0,1) reparameterization noise
    c = act[:, 80:81]                       # conditional data

    relu = lambda v: jnp.maximum(v, 0.0)

    def wmat(name):
        r, nr, nc = W_LAYOUT[name]
        return w_ref[r:r + nr, 0:nc].astype(f32)   # bf16 slab -> f32 operand

    def brow(name):
        r, nc = B_LAYOUT[name]
        return b_ref[r:r + 1, 0:nc]

    def dense(a, name, bname=None, extra=None):
        y = jnp.dot(a, wmat(name), preferred_element_type=f32)
        y = y + brow(name if bname is None else bname)
        if extra is not None:
            y = y + extra
        return y

    # encode: ReLU(conv1(x)) as two lane-aligned matmul bands (144 = 128 + 16 output cols).
    xf_a = relu(dense(x, 'conv_a'))                                   # (TM, 128)
    xf_b = relu(dense(x, 'conv_b'))                                   # (TM, 16)

    # encoder MLP; the 144-wide contraction is split to match the conv bands.
    h = relu(jnp.dot(xf_a, wmat('e0_a'), preferred_element_type=f32)
             + jnp.dot(xf_b, wmat('e0_b'), preferred_element_type=f32)
             + brow('e0'))                                            # (TM, 64)
    h = relu(dense(h, 'e1'))                                          # (TM, 32)
    # linear_enc on hstack((h, c)): h-part matmul + c-column broadcast.
    g = relu(dense(h, 'le', extra=c * brow('le_c')))                  # (TM, 32)

    mu = dense(g, 'lm')                                               # (TM, 16)
    s_logit = dense(g, 'ls')                                          # (TM, 16) = log(sigma)
    sigma = jnp.exp(s_logit)
    z = mu + sigma * eps
    kl_terms = sigma * sigma + mu * mu - s_logit - 0.5                # pre-exp logit, no log(exp)

    # decode: ReLU on hstack((z, c)), Linear(17,64), ReLU, Linear(64,144), ReLU,
    # then ConvTranspose2d(4,1,3)+ReLU as two lane-aligned matmul bands.
    d = relu(dense(relu(z), 'd1', extra=relu(c) * brow('d1_c')))      # (TM, 64)
    d_a = relu(dense(d, 'd0_a'))                                      # (TM, 128)
    d_b = relu(dense(d, 'd0_b'))                                      # (TM, 16)
    recon = relu(jnp.dot(d_a, wmat('deconv_a'), preferred_element_type=f32)
                 + jnp.dot(d_b, wmat('deconv_b'), preferred_element_type=f32)
                 + brow('deconv'))                                    # (TM, 64)

    # Single lane-dense (TM,128) output slab: recon | per-row KL terms | zero padding.
    out_ref[:, 0:64] = recon
    out_ref[:, 64:80] = kl_terms
    out_ref[:, 80:128] = jnp.zeros((act.shape[0], 48), f32)


@jax.jit
def cvae_conv_forward(x, c, eps, packed):
    n = x.shape[0]
    n_pad = pl.cdiv(n, TM) * TM

    # Pack the three activation inputs into one lane-dense (N_pad, 128) slab.
    slab = jnp.zeros((n_pad, 128), jnp.float32)
    slab = slab.at[:n, 0:64].set(x.reshape(n, 64))
    slab = slab.at[:n, 64:80].set(eps)
    slab = slab.at[:n, 80:81].set(c)

    out_slab = pl.pallas_call(
        cvae_fused_kernel,
        out_shape=jax.ShapeDtypeStruct((n_pad, 128), jnp.float32),
        grid_spec=pltpu.PrefetchScalarGridSpec(
            num_scalar_prefetch=0,
            grid=(n_pad // TM,),
            in_specs=[
                pl.BlockSpec((TM, 128), lambda i: (i, 0)),            # activation tile
                pl.BlockSpec((W_ROWS, W_COLS), lambda i: (0, 0)),     # weight slab, resident
                pl.BlockSpec((B_ROWS, 128), lambda i: (0, 0)),        # bias slab, resident
            ],
            out_specs=pl.BlockSpec((TM, 128), lambda i: (i, 0)),
        ),
        compiler_params=pltpu.CompilerParams(
            dimension_semantics=("parallel",)),
    )(slab, packed['w'], packed['b'])

    recon = out_slab[:n, 0:64].reshape(n, 1, 8, 8)
    kl = jnp.sum(out_slab[:n, 64:80])
    return recon, kl


# ---------------------------------------------------------------------------
# Parameter init (PyTorch-style uniform), bf16 weight rounding, and one-time packing.
# ---------------------------------------------------------------------------
def init_params(key):
    def lin(k, fan_in, fan_out):
        k1, k2 = jax.random.split(k)
        bound = 1.0 / float(np.sqrt(fan_in))
        w = jax.random.uniform(k1, (fan_in, fan_out), jnp.float32, -bound, bound)
        b = jax.random.uniform(k2, (1, fan_out), jnp.float32, -bound, bound)
        return w, b

    keys = jax.random.split(key, 11)
    p = {}
    bound = 1.0 / 3.0  # sqrt(1*3*3)
    p['conv1_w'] = jax.random.uniform(keys[0], (4, 9), jnp.float32, -bound, bound)
    p['conv1_b'] = jax.random.uniform(keys[1], (4,), jnp.float32, -bound, bound)
    p['e0w'], p['e0b'] = lin(keys[2], 144, 64)
    p['e1w'], p['e1b'] = lin(keys[3], 64, 32)
    lew, p['leb'] = lin(keys[4], 33, 32)          # linear_enc Linear(33,32)
    p['lewh'], p['lewc'] = lew[:32], lew[32:33]
    p['lmw'], p['lmb'] = lin(keys[5], 32, 16)
    p['lsw'], p['lsb'] = lin(keys[6], 32, 16)
    d1w, p['d1b'] = lin(keys[7], 17, 64)          # decoder Linear(17,64)
    p['d1wz'], p['d1wc'] = d1w[:16], d1w[16:17]
    p['d0w'], p['d0b'] = lin(keys[8], 64, 144)
    bound = 1.0 / 6.0  # sqrt(4*3*3)
    p['deconv_w'] = jax.random.uniform(keys[9], (4, 9), jnp.float32, -bound, bound)
    p['deconv_b'] = jax.random.uniform(keys[10], (1,), jnp.float32, -bound, bound)
    return p


def round_weights_bf16(p):
    """Round weight matrices to bf16 (biases stay f32) so kernel and reference match."""
    q = dict(p)
    for k in ('conv1_w', 'e0w', 'e1w', 'lewh', 'lewc', 'lmw', 'lsw',
              'd1wz', 'd1wc', 'd0w', 'deconv_w'):
        q[k] = p[k].astype(jnp.bfloat16).astype(jnp.float32)
    return q


def _conv_pattern():
    # P[h*8+w, i*6+j, ki*3+kj] = 1  iff  h == i+ki and w == j+kj  (3x3 valid window on 8x8)
    P = np.zeros((64, 36, 9), np.float32)
    for i in range(6):
        for j in range(6):
            for ki in range(3):
                for kj in range(3):
                    P[(i + ki) * 8 + (j + kj), i * 6 + j, ki * 3 + kj] = 1.0
    return jnp.asarray(P)


def pack_params(p):
    P = _conv_pattern()
    # Conv2d(1,4,3) -> (64,144): WC[h*8+w, co*36+i*6+j] = w[co, h-i, w-j]
    wc = jnp.einsum('xpk,ck->xcp', P, p['conv1_w']).reshape(64, 144)
    # ConvTranspose2d(4,1,3) -> (144,64): WD[c*36+i*6+j, oh*8+ow] = wt[c, oh-i, ow-j]
    wd = jnp.einsum('ypk,ck->cpy', P, p['deconv_w']).reshape(144, 64)

    mats = {
        'conv_a':   wc[:, 0:128],      'conv_b':   wc[:, 128:144],
        'e0_a':     p['e0w'][0:128],   'e0_b':     p['e0w'][128:144],
        'e1':       p['e1w'],
        'le':       p['lewh'],
        'lm':       p['lmw'],          'ls':       p['lsw'],
        'd1':       p['d1wz'],
        'd0_a':     p['d0w'][:, 0:128], 'd0_b':    p['d0w'][:, 128:144],
        'deconv_a': wd[0:128],         'deconv_b': wd[128:144],
    }
    wslab = jnp.zeros((W_ROWS, W_COLS), jnp.float32)
    for name, (r, nr, nc) in W_LAYOUT.items():
        m = mats[name]
        assert m.shape == (nr, nc)
        wslab = wslab.at[r:r + nr, 0:nc].set(m)
    wslab = wslab.astype(jnp.bfloat16)      # halve weight DMA bytes; exact (pre-rounded)

    conv_bias = jnp.repeat(p['conv1_b'], 36).reshape(1, 144)
    rows = {
        'conv_a': conv_bias[:, 0:128], 'conv_b': conv_bias[:, 128:144],
        'e0':     p['e0b'],
        'e1':     p['e1b'],
        'le':     p['leb'],            'le_c':   p['lewc'],
        'lm':     p['lmb'],            'ls':     p['lsb'],
        'd1':     p['d1b'],            'd1_c':   p['d1wc'],
        'd0_a':   p['d0b'][:, 0:128],  'd0_b':   p['d0b'][:, 128:144],
        'deconv': jnp.full((1, 64), p['deconv_b'][0], jnp.float32),
    }
    bslab = jnp.zeros((B_ROWS, 128), jnp.float32)
    for name, (r, nc) in B_LAYOUT.items():
        v = rows[name]
        assert v.shape == (1, nc)
        bslab = bslab.at[r:r + 1, 0:nc].set(v)

    return {'w': wslab, 'b': bslab}


# ---------------------------------------------------------------------------
# Pure-JAX reference (matches the PyTorch semantics) for a correctness check.
# ---------------------------------------------------------------------------
@jax.jit
def reference_forward(x, c, eps, p):
    n = x.shape[0]
    w = p['conv1_w'].reshape(4, 3, 3)
    feat = []
    for co in range(4):
        acc = jnp.zeros((n, 6, 6), jnp.float32) + p['conv1_b'][co]
        for ki in range(3):
            for kj in range(3):
                acc = acc + x[:, 0, ki:ki + 6, kj:kj + 6] * w[co, ki, kj]
        feat.append(jnp.maximum(acc, 0.0))
    xf = jnp.stack(feat, axis=1).reshape(n, 144)

    h = jnp.maximum(xf @ p['e0w'] + p['e0b'], 0.0)
    h = jnp.maximum(h @ p['e1w'] + p['e1b'], 0.0)
    g = jnp.maximum(h @ p['lewh'] + c * p['lewc'] + p['leb'], 0.0)
    mu = g @ p['lmw'] + p['lmb']
    s_logit = g @ p['lsw'] + p['lsb']
    sigma = jnp.exp(s_logit)
    z = mu + sigma * eps
    kl = jnp.sum(sigma ** 2 + mu ** 2 - s_logit - 0.5)

    d = jnp.maximum(jnp.maximum(z, 0.0) @ p['d1wz']
                    + jnp.maximum(c, 0.0) * p['d1wc'] + p['d1b'], 0.0)
    d = jnp.maximum(d @ p['d0w'] + p['d0b'], 0.0)
    xd = d.reshape(n, 4, 6, 6)

    wt = p['deconv_w'].reshape(4, 3, 3)
    out = jnp.zeros((n, 8, 8), jnp.float32) + p['deconv_b'][0]
    for cc in range(4):
        for kh in range(3):
            for kw in range(3):
                out = out.at[:, kh:kh + 6, kw:kw + 6].add(xd[:, cc] * wt[cc, kh, kw])
    return jnp.maximum(out, 0.0)[:, None], kl


if __name__ == "__main__":
    key = jax.random.PRNGKey(0)
    kx, kc, ke, kp = jax.random.split(key, 4)
    x = jax.random.normal(kx, (N_BATCH, 1, H, W), jnp.float32)      # input image batch
    c = jax.random.normal(kc, (N_BATCH, 1), jnp.float32)            # conditional data
    eps = jax.random.normal(ke, (N_BATCH, LATENT), jnp.float32)     # N(0,1) reparam noise

    params = round_weights_bf16(init_params(kp))                    # bf16-rounded weights
    packed = pack_params(params)                                    # one-time weight packing

    out, kl = cvae_conv_forward(x, c, eps, packed)
    jax.block_until_ready((out, kl))
    assert out.shape == (N_BATCH, 1, 8, 8)

    ref_out, ref_kl = reference_forward(x, c, eps, params)
    assert jnp.allclose(out, ref_out, rtol=1e-3, atol=1e-3), "output mismatch vs reference"
    assert jnp.allclose(kl, ref_kl, rtol=1e-3, atol=1e-3), "KL mismatch vs reference"

    print("KERNEL_OK")
</pallas_src>

<mosaic_0001>
module attributes {stable_mosaic.version = 11 : i64} {
  func.func @cvae_fused_kernel(%arg0: i32, %arg1: memref<8x128xf32, #tpu.memory_space<vmem>>, %arg2: memref<720x128xbf16, #tpu.memory_space<vmem>>, %arg3: memref<13x128xf32, #tpu.memory_space<vmem>>, %arg4: memref<8x128xf32, #tpu.memory_space<vmem>>) attributes {dimension_semantics = [#tpu.dimension_semantics<parallel>], iteration_bounds = array<i64: 2>, scalar_prefetch = 0 : i64, scratch_operands = 0 : i64, tpu.core_type = #tpu.core_type<tc>, window_params = [{transform_indices = @transform_0, window_bounds = array<i64: 8, 128>}, {pipeline_mode = #tpu.pipeline_mode<synchronous>, transform_indices = @transform_1, window_bounds = array<i64: 720, 128>}, {pipeline_mode = #tpu.pipeline_mode<synchronous>, transform_indices = @transform_2, window_bounds = array<i64: 13, 128>}, {transform_indices = @transform_3, window_bounds = array<i64: 8, 128>}]} {
    %c0 = arith.constant 0 : index
    %c0_0 = arith.constant 0 : index
    %0 = vector.load %arg1[%c0, %c0_0] : memref<8x128xf32, #tpu.memory_space<vmem>>, vector<8x128xf32>
    %1 = vector.extract_strided_slice %0 {offsets = [0, 0], sizes = [8, 64], strides = [1, 1]} : vector<8x128xf32> to vector<8x64xf32>
    %2 = vector.extract_strided_slice %0 {offsets = [0, 64], sizes = [8, 16], strides = [1, 1]} : vector<8x128xf32> to vector<8x16xf32>
    %3 = vector.extract_strided_slice %0 {offsets = [0, 80], sizes = [8, 1], strides = [1, 1]} : vector<8x128xf32> to vector<8x1xf32>
    %c0_1 = arith.constant 0 : index
    %c0_2 = arith.constant 0 : index
    %4 = vector.load %arg2[%c0_1, %c0_2] : memref<720x128xbf16, #tpu.memory_space<vmem>>, vector<64x128xbf16>
    %5 = arith.extf %4 : vector<64x128xbf16> to vector<64x128xf32>
    %cst = arith.constant dense<0.000000e+00> : vector<8x128xf32>
    %6 = tpu.matmul %1, %5, %cst {dimension_numbers = #tpu.dot_dimension_numbers<[1], [0], [0], [1], [0, 0, 1, 1], [], []>} : vector<8x64xf32>, vector<64x128xf32>, vector<8x128xf32> -> vector<8x128xf32>
    %c0_3 = arith.constant 0 : index
    %c0_4 = arith.constant 0 : index
    %7 = vector.load %arg3[%c0_3, %c0_4] : memref<13x128xf32, #tpu.memory_space<vmem>>, vector<1x128xf32>
    %8 = vector.broadcast %7 : vector<1x128xf32> to vector<8x128xf32>
    %9 = arith.addf %6, %8 : vector<8x128xf32>
    %cst_5 = arith.constant 0.000000e+00 : f32
    %10 = vector.broadcast %cst_5 : f32 to vector<8x128xf32>
    %11 = arith.maximumf %9, %10 : vector<8x128xf32>
    %c64 = arith.constant 64 : index
    %c0_6 = arith.constant 0 : index
    %12 = vector.load %arg2[%c64, %c0_6] : memref<720x128xbf16, #tpu.memory_space<vmem>>, vector<64x16xbf16>
    %13 = arith.extf %12 : vector<64x16xbf16> to vector<64x16xf32>
    %cst_7 = arith.constant dense<0.000000e+00> : vector<8x16xf32>
    %14 = tpu.matmul %1, %13, %cst_7 {dimension_numbers = #tpu.dot_dimension_numbers<[1], [0], [0], [1], [0, 0, 1, 1], [], []>} : vector<8x64xf32>, vector<64x16xf32>, vector<8x16xf32> -> vector<8x16xf32>
    %c1 = arith.constant 1 : index
    %c0_8 = arith.constant 0 : index
    %15 = vector.load %arg3[%c1, %c0_8] : memref<13x128xf32, #tpu.memory_space<vmem>>, vector<1x16xf32>
    %16 = vector.broadcast %15 : vector<1x16xf32> to vector<8x16xf32>
    %17 = arith.addf %14, %16 : vector<8x16xf32>
    %cst_9 = arith.constant 0.000000e+00 : f32
    %18 = vector.broadcast %cst_9 : f32 to vector<8x16xf32>
    %19 = arith.maximumf %17, %18 : vector<8x16xf32>
    %c128 = arith.constant 128 : index
    %c0_10 = arith.constant 0 : index
    %20 = vector.load %arg2[%c128, %c0_10] : memref<720x128xbf16, #tpu.memory_space<vmem>>, vector<128x64xbf16>
    %21 = arith.extf %20 : vector<128x64xbf16> to vector<128x64xf32>
    %cst_11 = arith.constant dense<0.000000e+00> : vector<8x64xf32>
    %22 = tpu.matmul %11, %21, %cst_11 {dimension_numbers = #tpu.dot_dimension_numbers<[1], [0], [0], [1], [0, 0, 1, 1], [], []>} : vector<8x128xf32>, vector<128x64xf32>, vector<8x64xf32> -> vector<8x64xf32>
    %c256 = arith.constant 256 : index
    %c0_12 = arith.constant 0 : index
    %23 = vector.load %arg2[%c256, %c0_12] : memref<720x128xbf16, #tpu.memory_space<vmem>>, vector<16x64xbf16>
    %24 = arith.extf %23 : vector<16x64xbf16> to vector<16x64xf32>
    %cst_13 = arith.constant dense<0.000000e+00> : vector<8x64xf32>
    %25 = tpu.matmul %19, %24, %cst_13 {dimension_numbers = #tpu.dot_dimension_numbers<[1], [0], [0], [1], [0, 0, 1, 1], [], []>} : vector<8x16xf32>, vector<16x64xf32>, vector<8x64xf32> -> vector<8x64xf32>
    %26 = arith.addf %22, %25 : vector<8x64xf32>
    %c2 = arith.constant 2 : index
    %c0_14 = arith.constant 0 : index
    %27 = vector.load %arg3[%c2, %c0_14] : memref<13x128xf32, #tpu.memory_space<vmem>>, vector<1x64xf32>
    %28 = vector.broadcast %27 : vector<1x64xf32> to vector<8x64xf32>
    %29 = arith.addf %26, %28 : vector<8x64xf32>
    %cst_15 = arith.constant 0.000000e+00 : f32
    %30 = vector.broadcast %cst_15 : f32 to vector<8x64xf32>
    %31 = arith.maximumf %29, %30 : vector<8x64xf32>
    %c272 = arith.constant 272 : index
    %c0_16 = arith.constant 0 : index
    %32 = vector.load %arg2[%c272, %c0_16] : memref<720x128xbf16, #tpu.memory_space<vmem>>, vector<64x32xbf16>
    %33 = arith.extf %32 : vector<64x32xbf16> to vector<64x32xf32>
    %cst_17 = arith.constant dense<0.000000e+00> : vector<8x32xf32>
    %34 = tpu.matmul %31, %33, %cst_17 {dimension_numbers = #tpu.dot_dimension_numbers<[1], [0], [0], [1], [0, 0, 1, 1], [], []>} : vector<8x64xf32>, vector<64x32xf32>, vector<8x32xf32> -> vector<8x32xf32>
    %c3 = arith.constant 3 : index
    %c0_18 = arith.constant 0 : index
    %35 = vector.load %arg3[%c3, %c0_18] : memref<13x128xf32, #tpu.memory_space<vmem>>, vector<1x32xf32>
    %36 = vector.broadcast %35 : vector<1x32xf32> to vector<8x32xf32>
    %37 = arith.addf %34, %36 : vector<8x32xf32>
    %cst_19 = arith.constant 0.000000e+00 : f32
    %38 = vector.broadcast %cst_19 : f32 to vector<8x32xf32>
    %39 = arith.maximumf %37, %38 : vector<8x32xf32>
    %c5 = arith.constant 5 : index
    %c0_20 = arith.constant 0 : index
    %40 = vector.load %arg3[%c5, %c0_20] : memref<13x128xf32, #tpu.memory_space<vmem>>, vector<1x32xf32>
    %41 = vector.broadcast %3 : vector<8x1xf32> to vector<8x32xf32>
    %42 = vector.broadcast %40 : vector<1x32xf32> to vector<8x32xf32>
    %43 = arith.mulf %41, %42 : vector<8x32xf32>
    %c336 = arith.constant 336 : index
    %c0_21 = arith.constant 0 : index
    %44 = vector.load %arg2[%c336, %c0_21] : memref<720x128xbf16, #tpu.memory_space<vmem>>, vector<32x32xbf16>
    %45 = arith.extf %44 : vector<32x32xbf16> to vector<32x32xf32>
    %cst_22 = arith.constant dense<0.000000e+00> : vector<8x32xf32>
    %46 = tpu.matmul %39, %45, %cst_22 {dimension_numbers = #tpu.dot_dimension_numbers<[1], [0], [0], [1], [0, 0, 1, 1], [], []>} : vector<8x32xf32>, vector<32x32xf32>, vector<8x32xf32> -> vector<8x32xf32>
    %c4 = arith.constant 4 : index
    %c0_23 = arith.constant 0 : index
    %47 = vector.load %arg3[%c4, %c0_23] : memref<13x128xf32, #tpu.memory_space<vmem>>, vector<1x32xf32>
    %48 = vector.broadcast %47 : vector<1x32xf32> to vector<8x32xf32>
    %49 = arith.addf %46, %48 : vector<8x32xf32>
    %50 = arith.addf %49, %43 : vector<8x32xf32>
    %cst_24 = arith.constant 0.000000e+00 : f32
    %51 = vector.broadcast %cst_24 : f32 to vector<8x32xf32>
    %52 = arith.maximumf %50, %51 : vector<8x32xf32>
    %c368 = arith.constant 368 : index
    %c0_25 = arith.constant 0 : index
    %53 = vector.load %arg2[%c368, %c0_25] : memref<720x128xbf16, #tpu.memory_space<vmem>>, vector<32x16xbf16>
    %54 = arith.extf %53 : vector<32x16xbf16> to vector<32x16xf32>
    %cst_26 = arith.constant dense<0.000000e+00> : vector<8x16xf32>
    %55 = tpu.matmul %52, %54, %cst_26 {dimension_numbers = #tpu.dot_dimension_numbers<[1], [0], [0], [1], [0, 0, 1, 1], [], []>} : vector<8x32xf32>, vector<32x16xf32>, vector<8x16xf32> -> vector<8x16xf32>
    %c6 = arith.constant 6 : index
    %c0_27 = arith.constant 0 : index
    %56 = vector.load %arg3[%c6, %c0_27] : memref<13x128xf32, #tpu.memory_space<vmem>>, vector<1x16xf32>
    %57 = vector.broadcast %56 : vector<1x16xf32> to vector<8x16xf32>
    %58 = arith.addf %55, %57 : vector<8x16xf32>
    %c400 = arith.constant 400 : index
    %c0_28 = arith.constant 0 : index
    %59 = vector.load %arg2[%c400, %c0_28] : memref<720x128xbf16, #tpu.memory_space<vmem>>, vector<32x16xbf16>
    %60 = arith.extf %59 : vector<32x16xbf16> to vector<32x16xf32>
    %cst_29 = arith.constant dense<0.000000e+00> : vector<8x16xf32>
    %61 = tpu.matmul %52, %60, %cst_29 {dimension_numbers = #tpu.dot_dimension_numbers<[1], [0], [0], [1], [0, 0, 1, 1], [], []>} : vector<8x32xf32>, vector<32x16xf32>, vector<8x16xf32> -> vector<8x16xf32>
    %c7 = arith.constant 7 : index
    %c0_30 = arith.constant 0 : index
    %62 = vector.load %arg3[%c7, %c0_30] : memref<13x128xf32, #tpu.memory_space<vmem>>, vector<1x16xf32>
    %63 = vector.broadcast %62 : vector<1x16xf32> to vector<8x16xf32>
    %64 = arith.addf %61, %63 : vector<8x16xf32>
    %65 = math.exp %64 : vector<8x16xf32>
    %66 = arith.mulf %65, %2 : vector<8x16xf32>
    %67 = arith.addf %58, %66 : vector<8x16xf32>
    %68 = arith.mulf %65, %65 : vector<8x16xf32>
    %69 = arith.mulf %58, %58 : vector<8x16xf32>
    %70 = arith.addf %68, %69 : vector<8x16xf32>
    %71 = arith.subf %70, %64 : vector<8x16xf32>
    %cst_31 = arith.constant 5.000000e-01 : f32
    %72 = vector.broadcast %cst_31 : f32 to vector<8x16xf32>
    %73 = arith.subf %71, %72 : vector<8x16xf32>
    %cst_32 = arith.constant 0.000000e+00 : f32
    %74 = vector.broadcast %cst_32 : f32 to vector<8x16xf32>
    %75 = arith.maximumf %67, %74 : vector<8x16xf32>
    %cst_33 = arith.constant 0.000000e+00 : f32
    %76 = vector.broadcast %cst_33 : f32 to vector<8x1xf32>
    %77 = arith.maximumf %3, %76 : vector<8x1xf32>
    %c9 = arith.constant 9 : index
    %c0_34 = arith.constant 0 : index
    %78 = vector.load %arg3[%c9, %c0_34] : memref<13x128xf32, #tpu.memory_space<vmem>>, vector<1x64xf32>
    %79 = vector.broadcast %77 : vector<8x1xf32> to vector<8x64xf32>
    %80 = vector.broadcast %78 : vector<1x64xf32> to vector<8x64xf32>
    %81 = arith.mulf %79, %80 : vector<8x64xf32>
    %c432 = arith.constant 432 : index
    %c0_35 = arith.constant 0 : index
    %82 = vector.load %arg2[%c432, %c0_35] : memref<720x128xbf16, #tpu.memory_space<vmem>>, vector<16x64xbf16>
    %83 = arith.extf %82 : vector<16x64xbf16> to vector<16x64xf32>
    %cst_36 = arith.constant dense<0.000000e+00> : vector<8x64xf32>
    %84 = tpu.matmul %75, %83, %cst_36 {dimension_numbers = #tpu.dot_dimension_numbers<[1], [0], [0], [1], [0, 0, 1, 1], [], []>} : vector<8x16xf32>, vector<16x64xf32>, vector<8x64xf32> -> vector<8x64xf32>
    %c8 = arith.constant 8 : index
    %c0_37 = arith.constant 0 : index
    %85 = vector.load %arg3[%c8, %c0_37] : memref<13x128xf32, #tpu.memory_space<vmem>>, vector<1x64xf32>
    %86 = vector.broadcast %85 : vector<1x64xf32> to vector<8x64xf32>
    %87 = arith.addf %84, %86 : vector<8x64xf32>
    %88 = arith.addf %87, %81 : vector<8x64xf32>
    %cst_38 = arith.constant 0.000000e+00 : f32
    %89 = vector.broadcast %cst_38 : f32 to vector<8x64xf32>
    %90 = arith.maximumf %88, %89 : vector<8x64xf32>
    %c448 = arith.constant 448 : index
    %c0_39 = arith.constant 0 : index
    %91 = vector.load %arg2[%c448, %c0_39] : memref<720x128xbf16, #tpu.memory_space<vmem>>, vector<64x128xbf16>
    %92 = arith.extf %91 : vector<64x128xbf16> to vector<64x128xf32>
    %cst_40 = arith.constant dense<0.000000e+00> : vector<8x128xf32>
    %93 = tpu.matmul %90, %92, %cst_40 {dimension_numbers = #tpu.dot_dimension_numbers<[1], [0], [0], [1], [0, 0, 1, 1], [], []>} : vector<8x64xf32>, vector<64x128xf32>, vector<8x128xf32> -> vector<8x128xf32>
    %c10 = arith.constant 10 : index
    %c0_41 = arith.constant 0 : index
    %94 = vector.load %arg3[%c10, %c0_41] : memref<13x128xf32, #tpu.memory_space<vmem>>, vector<1x128xf32>
    %95 = vector.broadcast %94 : vector<1x128xf32> to vector<8x128xf32>
    %96 = arith.addf %93, %95 : vector<8x128xf32>
    %cst_42 = arith.constant 0.000000e+00 : f32
    %97 = vector.broadcast %cst_42 : f32 to vector<8x128xf32>
    %98 = arith.maximumf %96, %97 : vector<8x128xf32>
    %c512 = arith.constant 512 : index
    %c0_43 = arith.constant 0 : index
    %99 = vector.load %arg2[%c512, %c0_43] : memref<720x128xbf16, #tpu.memory_space<vmem>>, vector<64x16xbf16>
    %100 = arith.extf %99 : vector<64x16xbf16> to vector<64x16xf32>
    %cst_44 = arith.constant dense<0.000000e+00> : vector<8x16xf32>
    %101 = tpu.matmul %90, %100, %cst_44 {dimension_numbers = #tpu.dot_dimension_numbers<[1], [0], [0], [1], [0, 0, 1, 1], [], []>} : vector<8x64xf32>, vector<64x16xf32>, vector<8x16xf32> -> vector<8x16xf32>
    %c11 = arith.constant 11 : index
    %c0_45 = arith.constant 0 : index
    %102 = vector.load %arg3[%c11, %c0_45] : memref<13x128xf32, #tpu.memory_space<vmem>>, vector<1x16xf32>
    %103 = vector.broadcast %102 : vector<1x16xf32> to vector<8x16xf32>
    %104 = arith.addf %101, %103 : vector<8x16xf32>
    %cst_46 = arith.constant 0.000000e+00 : f32
    %105 = vector.broadcast %cst_46 : f32 to vector<8x16xf32>
    %106 = arith.maximumf %104, %105 : vector<8x16xf32>
    %c576 = arith.constant 576 : index
    %c0_47 = arith.constant 0 : index
    %107 = vector.load %arg2[%c576, %c0_47] : memref<720x128xbf16, #tpu.memory_space<vmem>>, vector<128x64xbf16>
    %108 = arith.extf %107 : vector<128x64xbf16> to vector<128x64xf32>
    %cst_48 = arith.constant dense<0.000000e+00> : vector<8x64xf32>
    %109 = tpu.matmul %98, %108, %cst_48 {dimension_numbers = #tpu.dot_dimension_numbers<[1], [0], [0], [1], [0, 0, 1, 1], [], []>} : vector<8x128xf32>, vector<128x64xf32>, vector<8x64xf32> -> vector<8x64xf32>
    %c704 = arith.constant 704 : index
    %c0_49 = arith.constant 0 : index
    %110 = vector.load %arg2[%c704, %c0_49] : memref<720x128xbf16, #tpu.memory_space<vmem>>, vector<16x64xbf16>
    %111 = arith.extf %110 : vector<16x64xbf16> to vector<16x64xf32>
    %cst_50 = arith.constant dense<0.000000e+00> : vector<8x64xf32>
    %112 = tpu.matmul %106, %111, %cst_50 {dimension_numbers = #tpu.dot_dimension_numbers<[1], [0], [0], [1], [0, 0, 1, 1], [], []>} : vector<8x16xf32>, vector<16x64xf32>, vector<8x64xf32> -> vector<8x64xf32>
    %113 = arith.addf %109, %112 : vector<8x64xf32>
    %c12 = arith.constant 12 : index
    %c0_51 = arith.constant 0 : index
    %114 = vector.load %arg3[%c12, %c0_51] : memref<13x128xf32, #tpu.memory_space<vmem>>, vector<1x64xf32>
    %115 = vector.broadcast %114 : vector<1x64xf32> to vector<8x64xf32>
    %116 = arith.addf %113, %115 : vector<8x64xf32>
    %cst_52 = arith.constant 0.000000e+00 : f32
    %117 = vector.broadcast %cst_52 : f32 to vector<8x64xf32>
    %118 = arith.maximumf %116, %117 : vector<8x64xf32>
    %c0_53 = arith.constant 0 : index
    %c0_54 = arith.constant 0 : index
    %119 = vector.load %arg4[%c0_53, %c0_54] : memref<8x128xf32, #tpu.memory_space<vmem>>, vector<8x64xf32>
    tpu.vector_store %arg4[%c0_53, %c0_54], %118 {strides = array<i32>} : memref<8x128xf32, #tpu.memory_space<vmem>>, vector<8x64xf32>,
    %c0_55 = arith.constant 0 : index
    %c64_56 = arith.constant 64 : index
    %120 = vector.load %arg4[%c0_55, %c64_56] : memref<8x128xf32, #tpu.memory_space<vmem>>, vector<8x16xf32>
    tpu.vector_store %arg4[%c0_55, %c64_56], %73 {strides = array<i32>} : memref<8x128xf32, #tpu.memory_space<vmem>>, vector<8x16xf32>,
    %cst_57 = arith.constant 0.000000e+00 : f32
    %121 = vector.broadcast %cst_57 : f32 to vector<8x48xf32>
    %c0_58 = arith.constant 0 : index
    %c80 = arith.constant 80 : index
    %122 = vector.load %arg4[%c0_58, %c80] : memref<8x128xf32, #tpu.memory_space<vmem>>, vector<8x48xf32>
    tpu.vector_store %arg4[%c0_58, %c80], %121 {strides = array<i32>} : memref<8x128xf32, #tpu.memory_space<vmem>>, vector<8x48xf32>,
    return
  }
  func.func @transform_0(%arg0: i32) -> (i32, i32) {
    %c0_i32 = arith.constant 0 : i32
    %c0_i32_0 = arith.constant 0 : i32
    return %arg0, %c0_i32 : i32, i32
  }
  func.func @transform_1(%arg0: i32) -> (i32, i32) {
    %c0_i32 = arith.constant 0 : i32
    %c0_i32_0 = arith.constant 0 : i32
    %c0_i32_1 = arith.constant 0 : i32
    return %c0_i32, %c0_i32_0 : i32, i32
  }
  func.func @transform_2(%arg0: i32) -> (i32, i32) {
    %c0_i32 = arith.constant 0 : i32
    %c0_i32_0 = arith.constant 0 : i32
    %c0_i32_1 = arith.constant 0 : i32
    return %c0_i32, %c0_i32_0 : i32, i32
  }
  func.func @transform_3(%arg0: i32) -> (i32, i32) {
    %c0_i32 = arith.constant 0 : i32
    %c0_i32_0 = arith.constant 0 : i32
    return %arg0, %c0_i32 : i32, i32
  }
}

</mosaic_0001>

<bundles_post_ra>
// kernel: cvae_conv_forward.1
= control target key start
LH: loop header
LB: loop body
LE: loop exit
PB: predicated region body
PF: predicated region fallthrough
CT: control target
= control target key end

     0   :  { %s2214_s12 = smov 0   ;;  %s2505_s0 = inlined_call_operand.vmem [shape: f32[16,128], index: 0, kind: input, shape index: {}]   ;;  %s2506_s1 = inlined_call_operand.vmem [shape: bf16[720,128], index: 1, kind: input, shape index: {}]   ;;  %s2507_s2 = inlined_call_operand.vmem [shape: f32[13,128], index: 2, kind: input, shape index: {}]   ;;  %s2508_s3 = inlined_call_operand.vmem [shape: f32[16,128], index: 3, kind: output, shape index: {}]  }
   0x1 LB: > { %s1449_s13 = sadd.s32 4294967295, %s2187_s12   ;;  %p1453_p0 = scmp.ge.s32.totalorder %s2187_s12, 1  ;;  %s2187_s12 = sphi %s2214_s12, %s13_s12  }
   0x2   : > { %p136_p1 = scmp.lt.s32.totalorder %s2187_s12, 3 }
   0x4   : > { %p137_p2 = pnand %p1453_p0, %p136_p1 }
   0x5   : > { %v1484_v0 = vld [vmem:[%s2506_s1] sm:$0xff] (!%p137_p2)   ;;  %v2189_v1 = vmov (!%p137_p2), 0.0|0.0   ;;  %vm2190_vm0 = vmmov (!%p137_p2), 0   ;;  %v2191_v2 = vmov (!%p137_p2), 0.0   ;;  %p158_p3 = scmp.lt.s32.totalorder (!%p137_p2), %s1449_s13, 1  ;;  %v1663_v4 = vld [vmem:[%s2506_s1 + $0x8] sm:$0xff] (!%p137_p2)  }
   0x6   : > { %140 = sbr.rel (%p137_p2) target bundleno = 1794 (0x702), region = 32  ;;  %2029 = vmatprep.subr.bf16.mxu0 (!%p137_p2), %v2189_v1  ;;  %1826 = vmatprep.mubr.msk.f32.mxu0 (!%p137_p2), %vm2190_vm0, %v2191_v2  ;;  %v1670_v3 = vld [vmem:[%s2506_s1 + $0x40] sm:$0xff] (!%p137_p2)   ;;  %v1671_v5 = vld [vmem:[%s2506_s1 + $0x48] sm:$0xff] (!%p137_p2)   ;;  %v1664_v6 = vld [vmem:[%s2506_s1 + $0x10] sm:$0xff] (!%p137_p2)   ;;  %vm188_vm1 = vcmask (!%p137_p2), 523264   ;;  %vm391_vm2 = vcmask (!%p137_p2), 130048  }
   0x7   : > { %2031 = vmatpush3.bf16.msra.mxu0 (!%p137_p2), %v1484_v0  ;;  %2056 = vmatprep.subr.bf16.mxu1 (!%p137_p2), %v2189_v1  ;;  %v1672_v7 = vld [vmem:[%s2506_s1 + $0x50] sm:$0xff] (!%p137_p2)   ;;  %v1665_v8 = vld [vmem:[%s2506_s1 + $0x18] sm:$0xff] (!%p137_p2)   ;;  %v1666_v11 = vld [vmem:[%s2506_s1 + $0x20] sm:$0xff] (!%p137_p2)   ;;  %v2192_v44 = vmov (!%p137_p2), 80   ;;  %vm660_vm3 = vcmask (!%p137_p2), 261120   ;;  %s2193_s5 = smov (!%p137_p2), 64  }
   0x8   : > { %2032 = vmatprep.subr.bf16.mxu0 (!%p137_p2), %v2189_v1  ;;  %2058 = vmatpush3.bf16.msra.mxu1 (!%p137_p2), %v1670_v3  ;;  %v1673_v9 = vld [vmem:[%s2506_s1 + $0x58] sm:$0xff] (!%p137_p2)   ;;  %v1674_v12 = vld [vmem:[%s2506_s1 + $0x60] sm:$0xff] (!%p137_p2)   ;;  %v1667_v13 = vld [vmem:[%s2506_s1 + $0x28] sm:$0xff] (!%p137_p2)   ;;  %vm1392_vm4 = vcmask (!%p137_p2), 654848   ;;  %vm1394_vm5 = vcmask (!%p137_p2), 1048192  }
   0x9   : > { %2059 = vmatprep.subr.bf16.mxu1 (!%p137_p2), %v2189_v1  ;;  %1887 = vmatprep.mubr.msk.f32.mxu1 (!%p137_p2), %vm2190_vm0, %v2191_v2  ;;  %v1675_v14 = vld [vmem:[%s2506_s1 + $0x68] sm:$0xff] (!%p137_p2)   ;;  %v1668_v15 = vld [vmem:[%s2506_s1 + $0x30] sm:$0xff] (!%p137_p2)   ;;  %v1669_v17 = vld [vmem:[%s2506_s1 + $0x38] sm:$0xff] (!%p137_p2)  }
   0xa   : > { %v1676_v16 = vld [vmem:[%s2506_s1 + $0x70] sm:$0xff] (!%p137_p2)   ;;  %v1677_v18 = vld [vmem:[%s2506_s1 + $0x78] sm:$0xff] (!%p137_p2)   ;;  %v1678_v19 = vld [vmem:[%s2506_s1 + $0x80] sm:$0xff] (!%p137_p2)   ;;  %2177 = vset.pattern.permute.xlu0 (!%p137_p2), %v2192_v44  ;;  %2178 = vset.pattern.permute.xlu1 (!%p137_p2), %v2192_v44 }
   0xb   : > { %2034 = vmatpush3.bf16.msra.mxu0 (!%p137_p2), %v1663_v4  ;;  %v1456_v20 = vld [vmem:[%s2507_s2] ss:$0 sm:$0xff] (!%p137_p2)  ;;  %v1458_v25 = vld [vmem:[%s2507_s2 + $0x1] ss:$0 sm:$0xff] (!%p137_p2)  ;;  %v1679_v30 = vld [vmem:[%s2506_s1 + $0x88] sm:$0xff] (!%p137_p2)  }
   0xc   : > { %2035 = vmatprep.subr.bf16.mxu0 (!%p137_p2), %v2189_v1  ;;  %2061 = vmatpush3.bf16.msra.mxu1 (!%p137_p2), %v1671_v5  ;;  %v1680_v31 = vld [vmem:[%s2506_s1 + $0x90] sm:$0xff] (!%p137_p2)   ;;  %v1681_v32 = vld [vmem:[%s2506_s1 + $0x98] sm:$0xff] (!%p137_p2)   ;;  %v1682_v33 = vld [vmem:[%s2506_s1 + $0xa0] sm:$0xff] (!%p137_p2)  }
   0xd   : > { %s2510_s13 = smov (!%p158_p3, %s1449_s13), 1  ;;  %2062 = vmatprep.subr.bf16.mxu1 %v2189_v1  ;;  %v1461_v37 = vld [vmem:[%s2507_s2 + $0x2] ss:$0 sm:$0xff]  ;;  %v1683_v42 = vld [vmem:[%s2506_s1 + $0xa8] sm:$0xff]   ;;  %v1684_v43 = vld [vmem:[%s2506_s1 + $0xb0] sm:$0xff]  }
   0xe   : > { %s1454_s24 = sshll.u32 %s2510_s13, 3  ;;  %v1462_v45 = vld [vmem:[%s2507_s2 + $0x3] ss:$0 sm:$0xff]  ;;  %v1685_v50 = vld [vmem:[%s2506_s1 + $0xb8] sm:$0xff]   ;;  %v1687_v51 = vld [vmem:[%s2506_s1 + $0xc8] sm:$0xff]  }
   0xf   : > { %2037 = vmatpush3.bf16.msra.mxu0 %v1664_v6  ;;  %s161_s4 = scalar_lea.vmem %s2505_s0, %s1454_s24  ;;  %v1686_v52 = vld [vmem:[%s2506_s1 + $0xc0] sm:$0xff]   ;;  %v1688_v53 = vld [vmem:[%s2506_s1 + $0xd0] sm:$0xff]   ;;  %v1689_v0 = vld [vmem:[%s2506_s1 + $0xd8] sm:$0xff]   ;;  %s165_s16 = scalar_lea.vmem %s2508_s3, %s1454_s24 }
  0x10   : > { %2038 = vmatprep.subr.bf16.mxu0 %v2189_v1  ;;  %2064 = vmatpush3.bf16.msra.mxu1 %v1672_v7  ;;  %v2266_v10 = vld [vmem:[%s161_s4] sm:$0xff]  ;;  %v1703_v44 = vld [vmem:[%s2506_s1 + $0x148] sm:$0xff]  }
  0x11   : > { %2065 = vmatprep.subr.bf16.mxu1 %v2189_v1  ;;  %639 = vperm.xlu0 %2177, %v2266_v10   ;;  %v1464_v54 = vld [vmem:[%s2507_s2 + $0x5] ss:$0 sm:$0xff]  ;;  %v1465_v56 = vld [vmem:[%s2507_s2 + $0x4] ss:$0 sm:$0xff]  ;;  %v918_v63 = vmax.f32 %v2266_v10, 0.0 }
  0x12   : > { %v1469_v3 = vld [vmem:[%s2507_s2 + $0x7] ss:$0 sm:$0xff] }
  0x13   : > { %2040 = vmatpush3.bf16.msra.mxu0 %v1665_v8  ;;  %922 = vperm.xlu1 %2178, %v918_v63  }
  0x14   : > { %2041 = vmatprep.subr.bf16.mxu0 %v2189_v1  ;;  %2067 = vmatpush3.bf16.msra.mxu1 %v1673_v9 }
  0x15   : > { %2068 = vmatprep.subr.bf16.mxu1 %v2189_v1  ;;  %907 = vrot.lane.b32.xlu0 %v2266_v10, %s2193_s5 }
  0x16   : > { %1827 = vmatmul.mubr.msk.f32.vlgmr.msra.gmra.mrb[0].mxu0 %vm188_vm1, %v2266_v10 }
  0x17   : > { %2043 = vmatpush3.bf16.msra.mxu0 %v1666_v11  ;;  %1845 = vmatprep.mubr.msk.f32.mxu0 %vm2190_vm0, %v2191_v2  ;;  %v1694_v11 = vld [vmem:[%s2506_s1 + $0x100] sm:$0xff]  }
  0x18   : > { %2044 = vmatprep.subr.bf16.mxu0 %v2189_v1  ;;  %2070 = vmatpush3.bf16.msra.mxu1 %v1674_v12 }
  0x19   : > { %2071 = vmatprep.subr.bf16.mxu1 %v2189_v1 }
  0x1b   : > { %2046 = vmatpush3.bf16.msra.mxu0 %v1667_v13  ;;  %v1695_v13 = vld [vmem:[%s2506_s1 + $0x108] sm:$0xff]  }
  0x1c   : > { %2047 = vmatprep.subr.bf16.mxu0 %v2189_v1  ;;  %2073 = vmatpush3.bf16.msra.mxu1 %v1675_v14 }
  0x1d   : > { %2074 = vmatprep.subr.bf16.mxu1 %v2189_v1 }
  0x1f   : > { %2049 = vmatpush3.bf16.msra.mxu0 %v1668_v15 }
  0x20   : > { %2050 = vmatprep.subr.bf16.mxu0 %v2189_v1  ;;  %2076 = vmatpush3.bf16.msra.mxu1 %v1676_v16 }
  0x21   : > { %2077 = vmatprep.subr.bf16.mxu1 %v2189_v1 }
  0x23   : > { %2052 = vmatpush3.bf16.msra.mxu0 %v1669_v17 }
  0x24   : > { %2053 = vmatprep.subr.bf16.mxu0 %v2189_v1  ;;  %2079 = vmatpush3.bf16.msra.mxu1 %v1677_v18 }
  0x25   : > { %2104 = vmatprep.subr.bf16.mxu1 %v2189_v1 }
  0x26   : > { %1846 = vmatmul.mubr.msk.f32.vlgmr.msra.gmra.mrb[2].mxu0 %vm188_vm1, %v2266_v10  ;;  %v1467_v10 = vld [vmem:[%s2507_s2 + $0x6] ss:$0 sm:$0xff] }
  0x27   : > { %1852 = vmatprep.mubr.msk.f32.mxu0 %vm2190_vm0, %v2191_v2  ;;  %2055 = vmatpush3.bf16.msra.mxu0 %v1678_v19 }
  0x28   : > { %2080 = vmatprep.subr.bf16.mxu0 %v2189_v1 }
  0x90   : > { %v640_v55 = vpop.permute.xlu0 %639 }
  0x91   : > { %v646_v57 = vmul.f32 %v1464_v54, %v640_v55 }
  0x94   : > { %v908_v14 = vpop.permute.xlu0 %907 }
  0xe9   : > { %v258_v21 = vpop.f32.mrb[0].mxu0 }
  0xea   : > { %v259_v22 = vadd.f32 %v1456_v20, %v258_v21  ;;  %v1828_v23 = vpop.f32.mrb[1].mxu0 }
  0xeb   : > { %v1690_v23 = vld [vmem:[%s2506_s1 + $0xe0] sm:$0xff]  }
  0xec   : > { %v262_v24 = vmax.f32 %v259_v22, 0.0 }
  0xee   : > { %1888 = vmatmul.mubr.f32.vlgmr.msra.gmra.mrb[0].mxu1 %v262_v24 }
  0xef   : > { %1939 = vmatprep.mubr.msk.f32.mxu1 %vm2190_vm0, %v2191_v2  ;;  %2106 = vmatpush3.bf16.msra.mxu1 %v1687_v51 }
  0xf0   : > { %2107 = vmatprep.subr.bf16.mxu1 %v2189_v1 }
  0xf3   : > { %2109 = vmatpush3.bf16.msra.mxu1 %v1688_v53 }
  0xf4   : > { %2125 = vmatprep.subr.bf16.mxu1 %v2189_v1 }
  0xf9   : > { %v350_v26 = vpop.f32.mrb[2].mxu0 }
  0xfa   : > { %v351_v27 = vadd.f32 %v1458_v25, %v350_v26  ;;  %v1847_v28 = vpop.f32.mrb[3].mxu0  ;;  %v1691_v25 = vld [vmem:[%s2506_s1 + $0xe8] sm:$0xff]   ;;  %v1692_v26 = vld [vmem:[%s2506_s1 + $0xf0] sm:$0xff]  }
  0xfb   : > { %v1693_v28 = vld [vmem:[%s2506_s1 + $0xf8] sm:$0xff]  }
  0xfc   : > { %v354_v29 = vmax.f32 %v351_v27, 0.0  ;;  %v1696_v27 = vld [vmem:[%s2506_s1 + $0x110] sm:$0xff]  }
  0xfe   : > { %1853 = vmatmul.mubr.msk.f32.vlgmr.msra.gmra.mrb[4].mxu0 %vm391_vm2, %v354_v29  ;;  %v1697_v29 = vld [vmem:[%s2506_s1 + $0x118] sm:$0xff]  }
  0xff   : > { %1906 = vmatprep.mubr.msk.f32.mxu0 %vm2190_vm0, %v2191_v2  ;;  %2082 = vmatpush3.bf16.msra.mxu0 %v1679_v30  ;;  %v1472_v30 = vld [vmem:[%s2507_s2 + $0x9] ss:$0 sm:$0xff] }
 0x100   : > { %2083 = vmatprep.subr.bf16.mxu0 %v2189_v1 }
 0x103   : > { %2085 = vmatpush3.bf16.msra.mxu0 %v1680_v31  ;;  %v923_v31 = vpop.permute.xlu1 %922 }
 0x104   : > { %2086 = vmatprep.subr.bf16.mxu0 %v2189_v1 }
 0x107   : > { %2088 = vmatpush3.bf16.msra.mxu0 %v1681_v32  ;;  %v1473_v32 = vld [vmem:[%s2507_s2 + $0x8] ss:$0 sm:$0xff] }
 0x108   : > { %2089 = vmatprep.subr.bf16.mxu0 %v2189_v1 }
 0x10b   : > { %2091 = vmatpush3.bf16.msra.mxu0 %v1682_v33  ;;  %v929_v33 = vmul.f32 %v1472_v30, %v923_v31 }
 0x10c   : > { %2092 = vmatprep.subr.bf16.mxu0 %v2189_v1 }
 0x1c1   : > { %v531_v34 = vpop.f32.mrb[0].mxu1 }
 0x1c2   : > { %v1889_v35 = vpop.f32.mrb[1].mxu1 }
 0x1d1   : > { %v461_v36 = vpop.f32.mrb[4].mxu0 }
 0x1d2   : > { %v532_v38 = vadd.f32 %v531_v34, %v461_v36  ;;  %v1854_v39 = vpop.f32.mrb[5].mxu0 }
 0x1d3   : > { %v1698_v39 = vld [vmem:[%s2506_s1 + $0x120] sm:$0xff]  }
 0x1d4   : > { %v540_v40 = vadd.f32 %v1461_v37, %v532_v38 }
 0x1d6   : > { %v541_v41 = vmax.f32 %v540_v40, 0.0  ;;  %v1699_v40 = vld [vmem:[%s2506_s1 + $0x128] sm:$0xff]  }
 0x1d8   : > { %1907 = vmatmul.mubr.msk.f32.vlgmr.msra.gmra.mrb[6].mxu0 %vm188_vm1, %v541_v41  ;;  %v1700_v41 = vld [vmem:[%s2506_s1 + $0x130] sm:$0xff]  }
 0x1d9   : > { %2094 = vmatpush3.bf16.msra.mxu0 %v1683_v42  ;;  %1917 = vmatprep.mubr.msk.f32.mxu0 %vm2190_vm0, %v2191_v2  ;;  %v1701_v42 = vld [vmem:[%s2506_s1 + $0x138] sm:$0xff]  }
 0x1da   : > { %2095 = vmatprep.subr.bf16.mxu0 %v2189_v1 }
 0x1dd   : > { %2097 = vmatpush3.bf16.msra.mxu0 %v1684_v43  ;;  %v1702_v43 = vld [vmem:[%s2506_s1 + $0x140] sm:$0xff]  }
 0x1de   : > { %2098 = vmatprep.subr.bf16.mxu0 %v2189_v1 }
 0x2ab   : > { %v632_v46 = vpop.f32.mrb[6].mxu0 }
 0x2ac   : > { %v633_v47 = vadd.f32 %v1462_v45, %v632_v46  ;;  %v1908_v48 = vpop.f32.mrb[7].mxu0  ;;  %v1704_v45 = vld [vmem:[%s2506_s1 + $0x150] sm:$0xff]   ;;  %v1706_v46 = vld [vmem:[%s2506_s1 + $0x160] sm:$0xff]  }
 0x2ad   : > { %v1475_v48 = vld [vmem:[%s2507_s2 + $0xa] ss:$0 sm:$0xff] }
 0x2ae   : > { %v636_v49 = vmax.f32 %v633_v47, 0.0  ;;  %v1705_v47 = vld [vmem:[%s2506_s1 + $0x158] sm:$0xff]  }
 0x2b0   : > { %1918 = vmatmul.mubr.msk.f32.vlgmr.msra.gmra.mrb[8].mxu0 %vm660_vm3, %v636_v49  ;;  %v1477_v49 = vld [vmem:[%s2507_s2 + $0xb] ss:$0 sm:$0xff] }
 0x2b1   : > { %1928 = vmatprep.mubr.msk.f32.mxu0 %vm2190_vm0, %v2191_v2  ;;  %2100 = vmatpush3.bf16.msra.mxu0 %v1685_v50 }
 0x2b2   : > { %2101 = vmatprep.subr.bf16.mxu0 %v2189_v1 }
 0x2b5   : > { %2103 = vmatpush3.bf16.msra.mxu0 %v1686_v52 }
 0x2b6   : > { %2110 = vmatprep.subr.bf16.mxu0 %v2189_v1 }
 0x383   : > { %v730_v58 = vpop.f32.mrb[8].mxu0 }
 0x384   : > { %v731_v59 = vadd.f32 %v1465_v56, %v730_v58  ;;  %v1919_v60 = vpop.f32.mrb[9].mxu0 }
 0x386   : > { %v734_v61 = vadd.f32 %v731_v59, %v646_v57  ;;  %v1480_v59 = vld [vmem:[%s2507_s2 + $0xc] ss:$0 sm:$0xff] }
 0x388   : > { %v735_v62 = vmax.f32 %v734_v61, 0.0 }
 0x38a   : > { %1929 = vmatmul.mubr.msk.f32.vlgmr.msra.gmra.mrb[10].mxu0 %vm660_vm3, %v735_v62  ;;  %1940 = vmatmul.mubr.msk.f32.vlgmr.msra.gmra.mrb[2].mxu1 %vm660_vm3, %v735_v62 }
 0x38b   : > { %1946 = vmatprep.mubr.msk.f32.mxu0 %vm2190_vm0, %v2191_v2  ;;  %1984 = vmatprep.mubr.msk.f32.mxu1 %vm2190_vm0, %v2191_v2 }
 0x38c   : > { %2112 = vmatpush3.bf16.msra.mxu0 %v1689_v0  ;;  %2127 = vmatpush3.bf16.msra.mxu1 %v1694_v11 }
 0x38d   : > { %2113 = vmatprep.subr.bf16.mxu0 %v2189_v1  ;;  %2128 = vmatprep.subr.bf16.mxu1 %v2189_v1 }
 0x390   : > { %2130 = vmatpush3.bf16.msra.mxu1 %v1695_v13 }
 0x391   : > { %2131 = vmatprep.subr.bf16.mxu1 %v2189_v1 }
 0x394   : > { %2133 = vmatpush3.bf16.msra.mxu1 %v1696_v27 }
 0x395   : > { %2134 = vmatprep.subr.bf16.mxu1 %v2189_v1 }
 0x398   : > { %2136 = vmatpush3.bf16.msra.mxu1 %v1697_v29 }
 0x399   : > { %2140 = vmatprep.subr.bf16.mxu1 %v2189_v1 }
 0x45d   : > { %v818_v4 = vpop.f32.mrb[10].mxu0  ;;  %v901_v5 = vpop.f32.mrb[2].mxu1 }
 0x45e   : > { %v902_v6 = vadd.f32 %v1469_v3, %v901_v5  ;;  %v1930_v7 = vpop.f32.mrb[11].mxu0  ;;  %v1941_v8 = vpop.f32.mrb[3].mxu1  ;;  %v819_v12 = vadd.f32 %v1467_v10, %v818_v4 }
 0x460   : > { %v905_v9 = vmul.f32 1.442695, %v902_v6  ;;  %v913_v16 = vmul.f32 %v819_v12, %v819_v12 }
 0x462   : > { %2179 = vpow2.f32 %v905_v9 }
 0x46c   : > { %v2180_v15 = vpop.eup %2179 }
 0x46d   : > { %v912_v17 = vmul.f32 %v2180_v15, %v2180_v15  ;;  %v910_v18 = vmul.f32 %v2180_v15, %v908_v14 }
 0x46f   : > { %v914_v19 = vadd.f32 %v913_v16, %v912_v17  ;;  %v911_v20 = vadd.f32 %v910_v18, %v819_v12 }
 0x471   : > { %v915_v21 = vsub.f32 %v914_v19, %v902_v6  ;;  %v917_v22 = vmax.f32 %v911_v20, 0.0 }
 0x473   : > { %v1471_v24 = vadd.f32 -0.5, %v915_v21  ;;  %1947 = vmatmul.mubr.msk.f32.vlgmr.msra.gmra.mrb[12].mxu0 %vm391_vm2, %v917_v22 }
 0x474   : > { %2115 = vmatpush3.bf16.msra.mxu0 %v1690_v23  ;;  %1965 = vmatprep.mubr.msk.f32.mxu0 %vm2190_vm0, %v2191_v2 }
 0x475   : > { %1389 = vrot.lane.b32.xlu1 %v1471_v24, %s2193_s5  ;;  %2116 = vmatprep.subr.bf16.mxu0 %v2189_v1 }
 0x478   : > { %2118 = vmatpush3.bf16.msra.mxu0 %v1691_v25 }
 0x479   : > { %2119 = vmatprep.subr.bf16.mxu0 %v2189_v1 }
 0x47c   : > { %2121 = vmatpush3.bf16.msra.mxu0 %v1692_v26 }
 0x47d   : > { %2122 = vmatprep.subr.bf16.mxu0 %v2189_v1 }
 0x480   : > { %2124 = vmatpush3.bf16.msra.mxu0 %v1693_v28 }
 0x481   : > { %2137 = vmatprep.subr.bf16.mxu0 %v2189_v1 }
 0x4e7   : > { %v1390_v3 = vpop.permute.xlu1 %1389 }
 0x546   : > { %v1008_v34 = vpop.f32.mrb[12].mxu0 }
 0x547   : > { %v1009_v35 = vadd.f32 %v1473_v32, %v1008_v34  ;;  %v1948_v36 = vpop.f32.mrb[13].mxu0 }
 0x549   : > { %v1012_v37 = vadd.f32 %v1009_v35, %v929_v33 }
 0x54b   : > { %v1013_v38 = vmax.f32 %v1012_v37, 0.0 }
 0x54d   : > { %1966 = vmatmul.mubr.msk.f32.vlgmr.msra.gmra.mrb[14].mxu0 %vm188_vm1, %v1013_v38  ;;  %1985 = vmatmul.mubr.msk.f32.vlgmr.msra.gmra.mrb[4].mxu1 %vm188_vm1, %v1013_v38 }
 0x54e   : > { %2142 = vmatpush3.bf16.msra.mxu1 %v1698_v39  ;;  %1991 = vmatprep.mubr.msk.f32.mxu0 %vm2190_vm0, %v2191_v2 }
 0x54f   : > { %2143 = vmatprep.subr.bf16.mxu1 %v2189_v1  ;;  %2026 = vmatprep.mubr.msk.f32.mxu1 %vm2190_vm0, %v2191_v2 }
 0x550   : > { %2139 = vmatpush3.bf16.msra.mxu0 %v1706_v46 }
 0x552   : > { %2145 = vmatpush3.bf16.msra.mxu1 %v1699_v40 }
 0x553   : > { %2146 = vmatprep.subr.bf16.mxu1 %v2189_v1 }
 0x556   : > { %2148 = vmatpush3.bf16.msra.mxu1 %v1700_v41 }
 0x557   : > { %2149 = vmatprep.subr.bf16.mxu1 %v2189_v1 }
 0x55a   : > { %2151 = vmatpush3.bf16.msra.mxu1 %v1701_v42 }
 0x55b   : > { %2152 = vmatprep.subr.bf16.mxu1 %v2189_v1 }
 0x55e   : > { %2154 = vmatpush3.bf16.msra.mxu1 %v1702_v43 }
 0x55f   : > { %2155 = vmatprep.subr.bf16.mxu1 %v2189_v1 }
 0x562   : > { %2157 = vmatpush3.bf16.msra.mxu1 %v1703_v44 }
 0x563   : > { %2158 = vmatprep.subr.bf16.mxu1 %v2189_v1 }
 0x566   : > { %2160 = vmatpush3.bf16.msra.mxu1 %v1704_v45 }
 0x567   : > { %2161 = vmatprep.subr.bf16.mxu1 %v2189_v1 }
 0x56a   : > { %2163 = vmatpush3.bf16.msra.mxu1 %v1705_v47 }
 0x620   : > { %v1104_v50 = vpop.f32.mrb[14].mxu0  ;;  %v1196_v1 = vpop.f32.mrb[4].mxu1 }
 0x621   : > { %v1105_v51 = vadd.f32 %v1475_v48, %v1104_v50  ;;  %v1197_v52 = vadd.f32 %v1477_v49, %v1196_v1  ;;  %v1967_v53 = vpop.f32.mrb[15].mxu0  ;;  %v1986_v54 = vpop.f32.mrb[5].mxu1 }
 0x623   : > { %v1108_v55 = vmax.f32 %v1105_v51, 0.0  ;;  %v1200_v56 = vmax.f32 %v1197_v52, 0.0 }
 0x625   : > { %1992 = vmatmul.mubr.msk.f32.vlgmr.msra.gmra.mrb[16].mxu0 %vm391_vm2, %v1200_v56  ;;  %2027 = vmatmul.mubr.f32.vlgmr.msra.gmra.mrb[6].mxu1 %v1108_v55 }
 0x6f8   : > { %v1306_v57 = vpop.f32.mrb[16].mxu0  ;;  %v1376_v58 = vpop.f32.mrb[6].mxu1 }
 0x6f9   : > { %v1377_v60 = vadd.f32 %v1376_v58, %v1306_v57  ;;  %v1993_v61 = vpop.f32.mrb[17].mxu0  ;;  %v2028_v62 = vpop.f32.mrb[7].mxu1 }
 0x6fb   : > { %v1385_v63 = vadd.f32 %v1480_v59, %v1377_v60 }
 0x6fd   : > { %v1386_v0 = vmax.f32 %v1385_v63, 0.0 }
 0x6ff   : > { %1387 = vst.msk [vmem:[%s165_s16] sm:$0xff] %vm188_vm1, %v1386_v0 }
 0x700   : > { %1393 = vst.msk [vmem:[%s165_s16] sm:$0xff] %vm1392_vm4, %v1390_v3 }
 0x701   : > { %1395 = vst.msk [vmem:[%s165_s16] sm:$0xff] %vm1394_vm5, %v2191_v2 }
 0x702 PF: > { %s13_s12 = sadd.s32 1, %s2187_s12  }
 0x703   : > { %p10_p4 = scmp.ge.s32.totalorder %s13_s12, 4  }
 0x705   :  { %12 = sbr.rel (!%p10_p4) target bundleno = 1 (0x1), region = 62 }

</bundles_post_ra>
